<compile_context>
chip_gen: v7x
topology: tpu7x:2x2x1
jax: 0.10.0
libtpu: 0.0.40
codegen_flags: <defaults>
</compile_context>

<pallas_src>
import functools

import jax
import jax.numpy as jnp
from jax.experimental import pallas as pl
from jax.experimental.pallas import tpu as pltpu


_MAX_P_TILE = 512  # lanes per pixel tile: >=512 lanes ~85% of HBM roofline, VMEM-safe on v7x


def _choose_p_tile(pixels):
    """Largest multiple-of-128 divisor of `pixels` that is <= _MAX_P_TILE (else full extent)."""
    if pixels % 128 != 0 or pixels <= _MAX_P_TILE:
        return pixels
    for t in range(_MAX_P_TILE, 127, -128):
        if pixels % t == 0:
            return t
    return pixels


def _sigmoid(x):
    return 1.0 / (1.0 + jnp.exp(-x))


def _dist_branch_kernel(inv_temp, params_ref, i_ref, bg_ref, u_ref, eps_p_ref,
                        rate_on_ref, z_ref):
    # params_ref block: (1, 3, TP) = [z_logits ; p_loc ; p_scale]
    params = params_ref[0]                        # (3, TP)
    logits = params[0:1]                          # (1, TP)
    p_loc = params[1:2]
    p_sc = params[2:3]

    u = u_ref[0]                                  # (MC, TP) uniform noise
    logistic = jnp.log(u) - jnp.log(1.0 - u)      # RelaxedBernoulli logistic noise (EUP)
    z_ref[0] = _sigmoid((logits + logistic) * inv_temp)

    p = p_loc + p_sc * eps_p_ref[0]               # Normal rsample of q_p, (MC, TP)
    rate_on_ref[0] = bg_ref[0] + i_ref[0] * p     # bg/I blocks (MC, 1) broadcast over lanes


def _profile_branch_kernel(inv_temp, params_ref, i_ref, bg_ref, u_ref,
                           rate_on_ref, z_ref):
    # params_ref block: (1, 2, TP) = [z_logits ; profile]
    params = params_ref[0]                        # (2, TP)
    logits = params[0:1]
    profile = params[1:2]

    u = u_ref[0]
    logistic = jnp.log(u) - jnp.log(1.0 - u)
    z_ref[0] = _sigmoid((logits + logistic) * inv_temp)

    rate_on_ref[0] = bg_ref[0] + i_ref[0] * profile


class TempBernoulliDecoder:
    """JAX/Pallas port of tempBernoulliDecoder (no learnable parameters)."""

    def __init__(self, mc_samples=100, temperature=2.0 / 3.0):
        self.mc_samples = int(mc_samples)
        self.temperature = float(temperature)

    def sample_noise(self, key, batch, pixels, p_is_distribution):
        # Noise drawn directly in [B, MC, ...] layout -> no transposes downstream.
        k1, k2, k3, k4 = jax.random.split(key, 4)
        eps_i = jax.random.normal(k1, (batch, self.mc_samples), jnp.float32)
        eps_bg = jax.random.normal(k2, (batch, self.mc_samples), jnp.float32)
        u = jax.random.uniform(k3, (batch, self.mc_samples, pixels), jnp.float32,
                               minval=1e-6, maxval=1.0 - 1e-6)
        eps_p = (jax.random.normal(k4, (batch, self.mc_samples, pixels), jnp.float32)
                 if p_is_distribution else None)
        return eps_i, eps_bg, u, eps_p

    def __call__(self, q_z, q_I, q_bg, q_p, key):
        probs = jnp.clip(q_z["probs"].astype(jnp.float32), 1e-6, 1.0 - 1e-6)
        B, P = probs.shape
        MC = self.mc_samples
        # stand-in for torch `hasattr(q_p, 'arg_constraints')`
        p_is_dist = isinstance(q_p, dict)

        eps_i, eps_bg, u, eps_p = self.sample_noise(key, B, P, p_is_dist)

        # Tiny per-(batch, mc) reparameterized Normal samples: do them in the wrapper.
        i_samples = (q_I["loc"].astype(jnp.float32)[:, None]
                     + q_I["scale"].astype(jnp.float32)[:, None] * eps_i)      # [B, MC]
        bg_samples = (q_bg["loc"].astype(jnp.float32)[:, None]
                      + q_bg["scale"].astype(jnp.float32)[:, None] * eps_bg)   # [B, MC]
        rate_off = bg_samples[:, :, None]                                      # [B, MC, 1]
        i3 = i_samples[:, :, None]                                             # [B, MC, 1]
        bg3 = bg_samples[:, :, None]                                           # [B, MC, 1]

        z_logits = jnp.log(probs) - jnp.log1p(-probs)                          # [B, P]

        if p_is_dist:
            params = jnp.stack([z_logits,
                                q_p["loc"].astype(jnp.float32),
                                q_p["scale"].astype(jnp.float32)], axis=1)     # [B, 3, P]
            kernel = functools.partial(_dist_branch_kernel, 1.0 / self.temperature)
        else:
            params = jnp.stack([z_logits, q_p.astype(jnp.float32)], axis=1)    # [B, 2, P]
            kernel = functools.partial(_profile_branch_kernel, 1.0 / self.temperature)
        npar = params.shape[1]

        tp = _choose_p_tile(P)
        n_tp = P // tp

        params_spec = pl.BlockSpec((1, npar, tp), lambda b, j: (b, 0, j))
        small_spec = pl.BlockSpec((1, MC, 1), lambda b, j: (b, 0, 0))
        big_spec = pl.BlockSpec((1, MC, tp), lambda b, j: (b, 0, j))

        if p_is_dist:
            inputs = (params, i3, bg3, u, eps_p)
            in_specs = [params_spec, small_spec, small_spec, big_spec, big_spec]
        else:
            inputs = (params, i3, bg3, u)
            in_specs = [params_spec, small_spec, small_spec, big_spec]

        out_shape = (jax.ShapeDtypeStruct((B, MC, P), jnp.float32),   # rate_on
                     jax.ShapeDtypeStruct((B, MC, P), jnp.float32))   # z_perm
        out_specs = (big_spec, big_spec)

        rate_on, z_perm = pl.pallas_call(
            kernel,
            grid=(B, n_tp),
            in_specs=in_specs,
            out_specs=out_specs,
            out_shape=out_shape,
            compiler_params=pltpu.CompilerParams(
                dimension_semantics=("parallel", "parallel")),
        )(*inputs)
        return rate_off, rate_on, z_perm


def _reference(decoder, q_z, q_I, q_bg, q_p, key):
    """Pure-JAX mirror of the PyTorch forward (same noise as the kernel path)."""
    probs = jnp.clip(q_z["probs"].astype(jnp.float32), 1e-6, 1.0 - 1e-6)
    B, P = probs.shape
    inv_t = 1.0 / decoder.temperature
    p_is_dist = isinstance(q_p, dict)
    eps_i, eps_bg, u, eps_p = decoder.sample_noise(key, B, P, p_is_dist)

    I = (q_I["loc"][:, None] + q_I["scale"][:, None] * eps_i)[..., None]      # [B, MC, 1]
    bg = (q_bg["loc"][:, None] + q_bg["scale"][:, None] * eps_bg)[..., None]  # [B, MC, 1]

    logits = (jnp.log(probs) - jnp.log1p(-probs))[:, None, :]                 # [B, 1, P]
    logistic = jnp.log(u) - jnp.log(1.0 - u)
    z = _sigmoid((logits + logistic) * inv_t)                                 # [B, MC, P]

    if p_is_dist:
        p = q_p["loc"][:, None, :] + q_p["scale"][:, None, :] * eps_p
    else:
        p = jnp.broadcast_to(q_p[:, None, :].astype(jnp.float32),
                             (B, decoder.mc_samples, P))
    rate_off = bg
    rate_on = bg + I * p
    return rate_off, rate_on, z


if __name__ == "__main__":
    # MC multiple of 8 (sublane-aligned); P = 32x32 image flattened -> exercises pixel tiling.
    B, P, MC = 2, 1024, 16
    root = jax.random.PRNGKey(0)
    kz, ki1, ki2, kb1, kb2, kp1, kp2, kprof, kn1, kn2 = jax.random.split(root, 10)

    q_z = {"probs": jax.nn.sigmoid(jax.random.normal(kz, (B, P), jnp.float32))}
    q_I = {"loc": jax.random.normal(ki1, (B,), jnp.float32),
           "scale": jax.nn.softplus(jax.random.normal(ki2, (B,), jnp.float32)) + 0.1}
    q_bg = {"loc": jax.random.normal(kb1, (B,), jnp.float32),
            "scale": jax.nn.softplus(jax.random.normal(kb2, (B,), jnp.float32)) + 0.1}
    q_p_dist = {"loc": jax.random.normal(kp1, (B, P), jnp.float32),
                "scale": jax.nn.softplus(jax.random.normal(kp2, (B, P), jnp.float32)) + 0.1}
    profile = jax.nn.softmax(jax.random.normal(kprof, (B, P), jnp.float32), axis=-1)

    dec = TempBernoulliDecoder(mc_samples=MC)

    # Branch 1: q_p is a distribution (torch: hasattr(q_p, 'arg_constraints')).
    out1 = dec(q_z, q_I, q_bg, q_p_dist, kn1)
    # Branch 2: q_p is a fixed per-pixel profile tensor.
    out2 = dec(q_z, q_I, q_bg, profile, kn2)
    jax.block_until_ready(out1)
    jax.block_until_ready(out2)

    ref1 = _reference(dec, q_z, q_I, q_bg, q_p_dist, kn1)
    ref2 = _reference(dec, q_z, q_I, q_bg, profile, kn2)

    expected_shapes = [(B, MC, 1), (B, MC, P), (B, MC, P)] * 2
    for got, want, shp in zip(out1 + out2, ref1 + ref2, expected_shapes):
        assert got.shape == shp, (got.shape, shp)
        assert jnp.allclose(got, want, atol=2e-5, rtol=1e-5), \
            float(jnp.max(jnp.abs(got - want)))

    print("KERNEL_OK")
</pallas_src>

<mosaic_0001>
module attributes {stable_mosaic.version = 11 : i64} {
  func.func @_dist_branch_kernel(%arg0: i32, %arg1: i32, %arg2: memref<1x3x512xf32, #tpu.memory_space<vmem>>, %arg3: memref<1x16x1xf32, #tpu.memory_space<vmem>>, %arg4: memref<1x16x1xf32, #tpu.memory_space<vmem>>, %arg5: memref<1x16x512xf32, #tpu.memory_space<vmem>>, %arg6: memref<1x16x512xf32, #tpu.memory_space<vmem>>, %arg7: memref<1x16x512xf32, #tpu.memory_space<vmem>>, %arg8: memref<1x16x512xf32, #tpu.memory_space<vmem>>) attributes {dimension_semantics = [#tpu.dimension_semantics<parallel>, #tpu.dimension_semantics<parallel>], iteration_bounds = array<i64: 2, 2>, scalar_prefetch = 0 : i64, scratch_operands = 0 : i64, tpu.core_type = #tpu.core_type<tc>, window_params = [{transform_indices = @transform_0, window_bounds = array<i64: 1, 3, 512>}, {transform_indices = @transform_1, window_bounds = array<i64: 1, 16, 1>}, {transform_indices = @transform_2, window_bounds = array<i64: 1, 16, 1>}, {transform_indices = @transform_3, window_bounds = array<i64: 1, 16, 512>}, {transform_indices = @transform_4, window_bounds = array<i64: 1, 16, 512>}, {transform_indices = @transform_5, window_bounds = array<i64: 1, 16, 512>}, {transform_indices = @transform_6, window_bounds = array<i64: 1, 16, 512>}]} {
    %c0 = arith.constant 0 : index
    %c0_0 = arith.constant 0 : index
    %c0_1 = arith.constant 0 : index
    %0 = vector.load %arg2[%c0, %c0_0, %c0_1] : memref<1x3x512xf32, #tpu.memory_space<vmem>>, vector<1x3x512xf32>
    %1 = vector.shape_cast %0 : vector<1x3x512xf32> to vector<3x512xf32>
    %2 = vector.extract_strided_slice %1 {offsets = [0, 0], sizes = [1, 512], strides = [1, 1]} : vector<3x512xf32> to vector<1x512xf32>
    %3 = vector.extract_strided_slice %1 {offsets = [1, 0], sizes = [1, 512], strides = [1, 1]} : vector<3x512xf32> to vector<1x512xf32>
    %4 = vector.extract_strided_slice %1 {offsets = [2, 0], sizes = [1, 512], strides = [1, 1]} : vector<3x512xf32> to vector<1x512xf32>
    %c0_2 = arith.constant 0 : index
    %c0_3 = arith.constant 0 : index
    %c0_4 = arith.constant 0 : index
    %5 = vector.load %arg5[%c0_2, %c0_3, %c0_4] : memref<1x16x512xf32, #tpu.memory_space<vmem>>, vector<1x16x512xf32>
    %6 = vector.shape_cast %5 : vector<1x16x512xf32> to vector<16x512xf32>
    %7 = math.log %6 : vector<16x512xf32>
    %cst = arith.constant 1.000000e+00 : f32
    %8 = vector.broadcast %cst : f32 to vector<16x512xf32>
    %9 = arith.subf %8, %6 : vector<16x512xf32>
    %10 = math.log %9 : vector<16x512xf32>
    %11 = arith.subf %7, %10 : vector<16x512xf32>
    %12 = vector.broadcast %2 : vector<1x512xf32> to vector<16x512xf32>
    %13 = arith.addf %12, %11 : vector<16x512xf32>
    %cst_5 = arith.constant 1.500000e+00 : f32
    %14 = vector.broadcast %cst_5 : f32 to vector<16x512xf32>
    %15 = arith.mulf %13, %14 : vector<16x512xf32>
    %cst_6 = arith.constant 0.000000e+00 : f32
    %16 = vector.broadcast %cst_6 : f32 to vector<16x512xf32>
    %17 = arith.subf %16, %15 : vector<16x512xf32>
    %18 = math.exp %17 : vector<16x512xf32>
    %cst_7 = arith.constant 1.000000e+00 : f32
    %19 = vector.broadcast %cst_7 : f32 to vector<16x512xf32>
    %20 = arith.addf %19, %18 : vector<16x512xf32>
    %cst_8 = arith.constant 1.000000e+00 : f32
    %21 = vector.broadcast %cst_8 : f32 to vector<16x512xf32>
    %22 = arith.divf %21, %20 : vector<16x512xf32>
    %c0_9 = arith.constant 0 : index
    %c0_10 = arith.constant 0 : index
    %c0_11 = arith.constant 0 : index
    %23 = vector.load %arg8[%c0_9, %c0_10, %c0_11] : memref<1x16x512xf32, #tpu.memory_space<vmem>>, vector<1x16x512xf32>
    %24 = vector.shape_cast %23 : vector<1x16x512xf32> to vector<16x512xf32>
    %25 = vector.shape_cast %22 : vector<16x512xf32> to vector<1x16x512xf32>
    tpu.vector_store %arg8[%c0_9, %c0_10, %c0_11], %25 {strides = array<i32>} : memref<1x16x512xf32, #tpu.memory_space<vmem>>, vector<1x16x512xf32>,
    %c0_12 = arith.constant 0 : index
    %c0_13 = arith.constant 0 : index
    %c0_14 = arith.constant 0 : index
    %26 = vector.load %arg6[%c0_12, %c0_13, %c0_14] : memref<1x16x512xf32, #tpu.memory_space<vmem>>, vector<1x16x512xf32>
    %27 = vector.shape_cast %26 : vector<1x16x512xf32> to vector<16x512xf32>
    %28 = vector.broadcast %4 : vector<1x512xf32> to vector<16x512xf32>
    %29 = arith.mulf %28, %27 : vector<16x512xf32>
    %30 = vector.broadcast %3 : vector<1x512xf32> to vector<16x512xf32>
    %31 = arith.addf %30, %29 : vector<16x512xf32>
    %c0_15 = arith.constant 0 : index
    %c0_16 = arith.constant 0 : index
    %c0_17 = arith.constant 0 : index
    %32 = vector.load %arg4[%c0_15, %c0_16, %c0_17] : memref<1x16x1xf32, #tpu.memory_space<vmem>>, vector<1x16x1xf32>
    %33 = vector.shape_cast %32 : vector<1x16x1xf32> to vector<16x1xf32>
    %c0_18 = arith.constant 0 : index
    %c0_19 = arith.constant 0 : index
    %c0_20 = arith.constant 0 : index
    %34 = vector.load %arg3[%c0_18, %c0_19, %c0_20] : memref<1x16x1xf32, #tpu.memory_space<vmem>>, vector<1x16x1xf32>
    %35 = vector.shape_cast %34 : vector<1x16x1xf32> to vector<16x1xf32>
    %36 = vector.broadcast %35 : vector<16x1xf32> to vector<16x512xf32>
    %37 = arith.mulf %36, %31 : vector<16x512xf32>
    %38 = vector.broadcast %33 : vector<16x1xf32> to vector<16x512xf32>
    %39 = arith.addf %38, %37 : vector<16x512xf32>
    %c0_21 = arith.constant 0 : index
    %c0_22 = arith.constant 0 : index
    %c0_23 = arith.constant 0 : index
    %40 = vector.load %arg7[%c0_21, %c0_22, %c0_23] : memref<1x16x512xf32, #tpu.memory_space<vmem>>, vector<1x16x512xf32>
    %41 = vector.shape_cast %40 : vector<1x16x512xf32> to vector<16x512xf32>
    %42 = vector.shape_cast %39 : vector<16x512xf32> to vector<1x16x512xf32>
    tpu.vector_store %arg7[%c0_21, %c0_22, %c0_23], %42 {strides = array<i32>} : memref<1x16x512xf32, #tpu.memory_space<vmem>>, vector<1x16x512xf32>,
    return
  }
  func.func @transform_0(%arg0: i32, %arg1: i32) -> (i32, i32, i32) {
    %c0_i32 = arith.constant 0 : i32
    %c0_i32_0 = arith.constant 0 : i32
    return %arg0, %c0_i32, %arg1 : i32, i32, i32
  }
  func.func @transform_1(%arg0: i32, %arg1: i32) -> (i32, i32, i32) {
    %c0_i32 = arith.constant 0 : i32
    %c0_i32_0 = arith.constant 0 : i32
    %c0_i32_1 = arith.constant 0 : i32
    return %arg0, %c0_i32, %c0_i32_0 : i32, i32, i32
  }
  func.func @transform_2(%arg0: i32, %arg1: i32) -> (i32, i32, i32) {
    %c0_i32 = arith.constant 0 : i32
    %c0_i32_0 = arith.constant 0 : i32
    %c0_i32_1 = arith.constant 0 : i32
    return %arg0, %c0_i32, %c0_i32_0 : i32, i32, i32
  }
  func.func @transform_3(%arg0: i32, %arg1: i32) -> (i32, i32, i32) {
    %c0_i32 = arith.constant 0 : i32
    %c0_i32_0 = arith.constant 0 : i32
    return %arg0, %c0_i32, %arg1 : i32, i32, i32
  }
  func.func @transform_4(%arg0: i32, %arg1: i32) -> (i32, i32, i32) {
    %c0_i32 = arith.constant 0 : i32
    %c0_i32_0 = arith.constant 0 : i32
    return %arg0, %c0_i32, %arg1 : i32, i32, i32
  }
  func.func @transform_5(%arg0: i32, %arg1: i32) -> (i32, i32, i32) {
    %c0_i32 = arith.constant 0 : i32
    %c0_i32_0 = arith.constant 0 : i32
    return %arg0, %c0_i32, %arg1 : i32, i32, i32
  }
  func.func @transform_6(%arg0: i32, %arg1: i32) -> (i32, i32, i32) {
    %c0_i32 = arith.constant 0 : i32
    %c0_i32_0 = arith.constant 0 : i32
    return %arg0, %c0_i32, %arg1 : i32, i32, i32
  }
}

</mosaic_0001>

<bundles_post_ra>
// kernel: tpu_custom_call.1
= control target key start
LH: loop header
LB: loop body
LE: loop exit
PB: predicated region body
PF: predicated region fallthrough
CT: control target
= control target key end

     0   :  { %s1815_s0 = inlined_call_operand.vmem [shape: f32[2,3,1024], index: 0, kind: input, shape index: {}]   ;;  %s1816_s1 = inlined_call_operand.vmem [shape: f32[2,16,1], index: 1, kind: input, shape index: {}]   ;;  %s1817_s2 = inlined_call_operand.vmem [shape: f32[2,16,1], index: 2, kind: input, shape index: {}]   ;;  %s1818_s3 = inlined_call_operand.hbm [shape: f32[2,16,1024], index: 3, kind: input, shape index: {}]   ;;  %s1819_s4 = inlined_call_operand.hbm [shape: f32[2,16,1024], index: 4, kind: input, shape index: {}]   ;;  %s1820_s5 = inlined_call_operand.hbm [shape: f32[2,16,1024], index: 5, kind: output, shape index: {0}]   ;;  %s1821_s6 = inlined_call_operand.hbm [shape: f32[2,16,1024], index: 6, kind: output, shape index: {1}]  }
   0x1   :  { %1831 = sst [smem:[#allocation20_spill]] %s1818_s3 }
   0x2   :  { %12 = vsyncpa [#allocation3], 0 }
   0x3   :  { %14 = vsyncpa [#allocation3 + $0x1], 0 }
   0x4   :  { %15 = vsyncpa [#allocation6], 0 }
   0x5   :  { %17 = vsyncpa [#allocation6 + $0x1], 0 }
   0x6   :  { %18 = vsyncpa [#allocation4], 0 }
   0x7   :  { %20 = vsyncpa [#allocation4 + $0x1], 0 }
   0x8   :  { %21 = vsyncpa [#allocation9], 0 }
   0x9   :  { %23 = vsyncpa [#allocation9 + $0x1], 0  ;;  %s1408_s21 = smov 0   ;;  %s1410_s22 = smov 0  }
   0xa   :  { %s1412_s23 = smov 0   ;;  %s1414_s24 = smov 0  }
   0xb   :  { %s1416_s25 = smov 0   ;;  %s1418_s26 = smov 0  }
   0xc   :  { %s1420_s27 = smov 0   ;;  %s1422_s28 = smov 0  }
   0xd LB: > { %1832 = sst [smem:[#allocation14_spill]] %s1340_s23  ;;  %s969_s29 = sadd.s32 4294967295, %s1360_s28   ;;  %s1360_s28 = sphi %s1422_s28, %s29_s28   ;;  %s1356_s27 = sphi %s1420_s27, %s1857_s27   ;;  %s1352_s26 = sphi %s1418_s26, %s1856_s26   ;;  %s1348_s25 = sphi %s1416_s25, %s1855_s25   ;;  %s1344_s24 = sphi %s1414_s24, %s1854_s24   ;;  %s1340_s23 = sphi %s1412_s23, %s1853_s23   ;;  %s1336_s22 = sphi %s1410_s22, %s1859_s22   ;;  %s1332_s21 = sphi %s1408_s21, %s1858_s21  }
   0xe   : > { %1833 = sst [smem:[#allocation15_spill]] %s1352_s26  ;;  %s970_s30 = sadd.s32 4294967294, %s1360_s28  }
   0xf   : > { %1834 = sst [smem:[#allocation16_spill]] %s1356_s27  ;;  %s38_s7 = sadd.s32 1, %s1352_s26 }
  0x10   : > { %s41_s8 = sadd.s32 1, %s1356_s27  ;;  %p39_p0 = scmp.ge.s32.totalorder %s38_s7, 2 }
  0x11   : > { %s130_s9 = sadd.s32 1, %s1340_s23  ;;  %p137_p1 = scmp.ne.s32.totalorder %s1340_s23, %s1336_s22 }
  0x12   : > { %p138_p2 = scmp.eq.s32.totalorder %s1360_s28, 0  ;;  %s1861_s7 = smov (%p39_p0, %s38_s7), 0 }
  0x13   : > { %1835 = sst [smem:[#allocation17_spill]] %s1861_s7  ;;  %s1863_s8 = smov (!%p39_p0, %s41_s8), %s1356_s27 }
  0x14   : > { %s126_s10 = ssub.s32 %s1352_s26, %s1861_s7  ;;  %p1461_p3 = por %p138_p2, %p137_p1 }
  0x15   : > { %p43_p4 = scmp.ge.s32.totalorder %s1863_s8, 2  ;;  %p143_p5 = scmp.ne.s32.totalorder %s1336_s22, %s1332_s21 }
  0x16   : > { %p144_p6 = scmp.eq.s32.totalorder %s969_s29, 0  ;;  %p197_p7 = scmp.eq.s32.totalorder %s969_s29, 3 }
  0x17   : > { %s1865_s8 = smov (%p43_p4, %s1863_s8), 0  ;;  %p203_p10 = scmp.eq.s32.totalorder %s970_s30, 3 }
  0x18   : > { %1837 = sst [smem:[#allocation18_spill]] %s1865_s8  ;;  %p1469_p8 = por %p144_p6, %p143_p5 }
  0x19   : > { %p1473_p9 = por %p197_p7, %p137_p1  ;;  %s125_s14 = ssub.s32 %s1356_s27, %s1865_s8 }
  0x1a   : > { %s1838_s12 = scalar_select %p1469_p8, 1, 0 }
  0x1b   : > { %s1839_s13 = scalar_select %p1473_p9, 1, 0 }
  0x1c   : > { %s127_s15 = sor.u32 %s126_s10, %s125_s14  ;;  %p1479_p12 = por %p203_p10, %p143_p5 }
  0x1d   : > { %p128_p11 = scmp.eq.s32.totalorder %s127_s15, 0  ;;  %p1027_p13 = scmp.lt.s32.totalorder %s1360_s28, 4 }
  0x1e   : > { %s1840_s16 = scalar_select %p1479_p12, 1, 0 }
  0x1f   : > { %s1485_s17 = sand.u32 1, %s1340_s23   ;;  %s974_s20 = sshll.u32 %s1352_s26, 2 }
  0x20   : > { %s1488_s18 = scalar_select %p128_p11, %s1340_s23, %s130_s9  }
  0x21   : > { %s1824_s19 = sshll.u32 %s1485_s17, 6  ;;  %s975_s29 = sshll.u32 %s1356_s27, 4 }
  0x22   : > { %1841 = sst [smem:[#allocation19_spill]] %s1488_s18  ;;  %s284_s30 = scalar_lea.vmem [#allocation2], %s1824_s19 }
  0x23   : > { %s293_s10 = sshll.u32 %s284_s30, 4  ;;  %s1495_s14 = sadd.s32 %s975_s29, %s974_s20  ;;  %s1497_s10 = int_to_ptr.vmem [resolvable:$true] %s293_s10 }
  0x24   : > { %s1825_s15 = sshll.u32 %s1495_s14, 7  ;;  %p1502_p0 = pnand %p1027_p13, %p1461_p3 }
  0x25   : > { %s1843_s3 = sld [smem:[#allocation20_spill]] }
  0x26   : > { %p1168_p3 = pneg %p1502_p0 }
  0x2b   : > { %s1511_s19 = scalar_lea.hbm %s1843_s3, %s1825_s15  ;;  %s1171_s30 = scalar_lea.hbm %s1843_s3, 4096 }
  0x2c   : > { %s1166_s29 = scalar_lea.hbm %s1511_s19, 1024  ;;  %p1172_p6 = scmp.lt.u32.totalorder %s1511_s19, %s1843_s3 }
  0x2d   : > { %p1167_p2 = scmp.ne.s32.totalorder %s1511_s19, %s1166_s29  ;;  %p1173_p7 = scmp.lt.u32.totalorder %s1171_s30, %s1166_s29 }
  0x2e   : > { %p1175_p11 = scmp.lt.u32.totalorder %s1166_s29, %s1511_s19 }
  0x2f   : > { %p1169_p4 = pnand %p1168_p3, %p1167_p2  ;;  %p1174_p10 = por %p1173_p7, %p1172_p6 }
  0x31   : > { %p1170_p5 = pneg %p1169_p4  ;;  %p1176_p13 = por %p1175_p11, %p1174_p10 }
  0x33   : > { %p1177_p1 = pnand %p1176_p13, %p1170_p5 }
  0x35   : > { %1180 = shalt.err (!%p1177_p1)
}
  0x36   : > { %s1181_s20 = scalar_lea.vmem %s1497_s10, 1024  ;;  %s1362_s11 = smov [#allocation2]  }
  0x37   : > { %p1182_p2 = scmp.ne.s32.totalorder %s1497_s10, %s1181_s20  ;;  %s1186_s7 = sshll.u32 %s1362_s11, 4  ;;  %s1187_s7 = int_to_ptr.vmem [resolvable:$false] %s1186_s7 }
  0x38   : > { %s1188_s15 = scalar_lea.vmem %s1187_s7, 2048  ;;  %p1189_p9 = scmp.lt.s32.totalorder %s1497_s10, %s1187_s7 }
  0x39   : > { %p1184_p4 = pnand %p1182_p2, %p1168_p3  ;;  %p1190_p6 = scmp.lt.s32.totalorder %s1188_s15, %s1181_s20 }
  0x3b   : > { %p1185_p12 = pneg %p1184_p4  ;;  %p1191_p7 = por %p1190_p6, %p1189_p9 }
  0x3d   : > { %p1192_p10 = pnand %p1191_p7, %p1185_p12 }
  0x3f   : > { %1195 = shalt.err (!%p1192_p10)
}
  0x40   : > { %s1363_s29 = smov 1024   ;;  %s1364_s30 = smov 512  }
  0x41   : > { %s1365_s9 = smov 32   ;;  %s1844_s20 = scalar_lea.sflag [#allocation3], %s1485_s17 }
  0x42   : > { %1016 = dma.hbm_to_vmem [thread:$0]  (!%p1502_p0), %s1511_s19, 1024, %s1497_s10, %s1844_s20, %s1363_s29, %s1364_s30, %s1365_s9  }
  0x43   : > { %p324_p9 = scmp.lt.s32.totalorder %s1360_s28, 5  ;;  %s1845_s11 = sshll.u32 %s1495_s14, 7 }
  0x44   : > { %s1551_s3 = scalar_lea.hbm %s1819_s4, %s1845_s11  ;;  %p1846_p12 = scmp.ge.s32.totalorder %s1360_s28, 1 }
  0x45   : > { %s1848_s26 = sshll.u32 %s1485_s17, 6  ;;  %s304_s19 = scalar_lea.sflag [#allocation6], %s1485_s17 }
  0x46   : > { %p1555_p1 = pnand %p1846_p12, %p324_p9  ;;  %s307_s18 = scalar_lea.vmem [#allocation5], %s1848_s26 }
  0x47   : > { %s316_s23 = sshll.u32 %s307_s18, 4  ;;  %s1196_s10 = scalar_lea.hbm %s1551_s3, 1024  ;;  %s1561_s23 = int_to_ptr.vmem [resolvable:$true] %s316_s23 }
  0x48   : > { %p1197_p5 = scmp.ne.s32.totalorder %s1551_s3, %s1196_s10  ;;  %s1201_s11 = scalar_lea.hbm %s1819_s4, 4096 }
  0x49   : > { %p1202_p2 = scmp.lt.u32.totalorder %s1551_s3, %s1819_s4  ;;  %p1203_p4 = scmp.lt.u32.totalorder %s1201_s11, %s1196_s10 }
  0x4a   : > { %p1199_p11 = pnand %p1197_p5, %p1168_p3  ;;  %p1205_p7 = scmp.lt.u32.totalorder %s1196_s10, %s1551_s3 }
  0x4b   : > { %p1204_p6 = por %p1203_p4, %p1202_p2 }
  0x4c   : > { %p1200_p13 = pneg %p1199_p11 }
  0x4d   : > { %p1206_p10 = por %p1205_p7, %p1204_p6 }
  0x4f   : > { %p1207_p9 = pnand %p1206_p10, %p1200_p13 }
  0x51   : > { %1210 = shalt.err (!%p1207_p9)
}
  0x52   : > { %s1211_s26 = scalar_lea.vmem %s1561_s23, 1024  ;;  %s1366_s18 = smov [#allocation5]  }
  0x53   : > { %p1212_p12 = scmp.ne.s32.totalorder %s1561_s23, %s1211_s26  ;;  %s1216_s14 = sshll.u32 %s1366_s18, 4  ;;  %s1217_s14 = int_to_ptr.vmem [resolvable:$false] %s1216_s14 }
  0x54   : > { %s1218_s20 = scalar_lea.vmem %s1217_s14, 2048  ;;  %p1219_p8 = scmp.lt.s32.totalorder %s1561_s23, %s1217_s14 }
  0x55   : > { %p1214_p5 = pnand %p1212_p12, %p1168_p3  ;;  %p1220_p2 = scmp.lt.s32.totalorder %s1218_s20, %s1211_s26 }
  0x57   : > { %p1215_p11 = pneg %p1214_p5  ;;  %p1221_p4 = por %p1220_p2, %p1219_p8 }
  0x59   : > { %p1222_p6 = pnand %p1221_p4, %p1215_p11 }
  0x5b   : > { %1225 = shalt.err (!%p1222_p6)
}
  0x5c   : > { %1019 = dma.hbm_to_vmem [thread:$0]  (!%p1502_p0), %s1551_s3, 1024, %s1561_s23, %s304_s19, %s1363_s29, %s1364_s30, %s1365_s9  }
  0x5d   : > { %328 = sbr.rel (%p1555_p1) target bundleno = 261 (0x105), region = 40  ;;  %s1595_s10 = sand.u32 (!%p1555_p1), 1, %s1336_s22  }
  0x5e   : > { %s1598_s11 = sshll.u32 (!%p1555_p1), %s1595_s10, 6  ;;  %s331_s8 = scalar_lea.sflag (!%p1555_p1), [#allocation3], %s1595_s10 }
  0x5f   : > { %s1602_s7 = scalar_lea.vmem (!%p1555_p1), [#allocation2], %s1598_s11  ;;  %p1849_p8 = scmp.ne.s32.totalorder (!%p1555_p1), %s1838_s12, 0 }
  0x64   : > { %1315 = dma.done.wait (%p1849_p8), %s331_s8, 1024  }
  0x65   : > { %1317 = vsyncadd (%p1849_p8), %s331_s8, 4294966272  ;;  %s340_s3 = scalar_lea.sflag [#allocation6], %s1595_s10  ;;  %s1610_s23 = scalar_lea.vmem [#allocation5], %s1598_s11 }
  0x66   : > { %1319 = dma.done.wait (%p1849_p8), %s340_s3, 1024  }
  0x67   : > { %1321 = vsyncadd (%p1849_p8), %s340_s3, 4294966272  ;;  %s1617_s27 = sshll.u32 %s1344_s24, 2  ;;  %v1367_v0 = vmov 0   ;;  %p402_p0 = scmp.lt.s32.totalorder %s1348_s25, 1  ;;  %v485_v1 = vlaneseq  ;;  %v427_v4 = vld [vmem:[%s1602_s7] sm:$0xff]  ;;  %v428_v5 = vld [vmem:[%s1602_s7 + $0x8] sm:$0xff] }
  0x68   : > { %1101 = vset.pattern.permute.xlu1 %v1367_v0  ;;  %1100 = vset.pattern.permute.xlu0 %v1367_v0  ;;  %p404_p3 = scmp.lt.s32.totalorder %s1617_s27, 7  ;;  %1102 = vlog2.f32 %v427_v4  ;;  %v429_v6 = vld [vmem:[%s1602_s7 + $0x10] sm:$0xff]  ;;  %v430_v9 = vld [vmem:[%s1602_s7 + $0x18] sm:$0xff]  ;;  %v431_v10 = vld [vmem:[%s1602_s7 + $0x20] sm:$0xff]  ;;  %v451_v19 = vsub.f32 1.0, %v427_v4  ;;  %v452_v20 = vsub.f32 1.0, %v428_v5 }
  0x69   : > { %s403_s17 = scalar_select %p402_p0, %s1348_s25, 1  ;;  %v1626_v2 = vshrl.u32 %v485_v1, 7  ;;  %1104 = vlog2.f32 %v428_v5  ;;  %v432_v13 = vld [vmem:[%s1602_s7 + $0x28] sm:$0xff]  ;;  %v1646_v14 = vld [vmem:[%s1602_s7 + $0x30] sm:$0xff]  ;;  %v453_v21 = vsub.f32 1.0, %v429_v6  ;;  %v454_v23 = vsub.f32 1.0, %v430_v9 }
  0x6a   : > { %s405_s29 = scalar_select %p404_p3, %s1617_s27, 7  ;;  %1106 = vlog2.f32 %v429_v6  ;;  %v434_v27 = vld [vmem:[%s1602_s7 + $0x38] sm:$0xff]  ;;  %v455_v28 = vsub.f32 1.0, %v431_v10  ;;  %v456_v29 = vsub.f32 1.0, %v432_v13  ;;  %v457_v30 = vsub.f32 1.0, %v1646_v14  ;;  %v593_v31 = vld [vmem:[%s1610_s23] sm:$0xff] }
  0x6b   : > { %s987_s12 = sshll.u32 %s403_s17, 3  ;;  %s1003_s30 = sshll.u32 %s403_s17, 4  ;;  %v603_v7 = vsub.s32 2, %v1626_v2  ;;  %v607_v8 = vsub.s32 6, %v1626_v2  ;;  %v1642_v12 = vsub.s32 0, %v1626_v2  ;;  %1108 = vlog2.f32 %v430_v9  ;;  %v594_v32 = vld [vmem:[%s1610_s23 + $0x8] sm:$0xff] }
  0x6c   : > { %s407_s9 = sadd.s32 %s987_s12, %s405_s29  ;;  %s415_s15 = scalar_lea.vmem %s1816_s1, %s1003_s30  ;;  %v647_v16 = vsub.s32 1, %v1626_v2  ;;  %v651_v17 = vsub.s32 5, %v1626_v2  ;;  %1110 = vlog2.f32 %v431_v10  ;;  %v595_v36 = vld [vmem:[%s1610_s23 + $0x10] sm:$0xff]  ;;  %v596_v37 = vld [vmem:[%s1610_s23 + $0x18] sm:$0xff]  ;;  %v458_v49 = vsub.f32 1.0, %v434_v27  ;;  %v597_v59 = vld [vmem:[%s1610_s23 + $0x20] sm:$0xff] }
  0x6d   : > { %s988_s26 = sshll.u32 %s407_s9, 2  ;;  %v691_v3 = vld [vmem:[%s415_s15] sm:$0xff]  ;;  %s420_s17 = scalar_lea.vmem %s1817_s2, %s1003_s30  ;;  %v692_v11 = vld [vmem:[%s415_s15 + $0x8] sm:$0xff]  ;;  %1112 = vlog2.f32 %v432_v13  ;;  %v491_v53 = vsub.s32 4, %v1626_v2  ;;  %v599_v61 = vld [vmem:[%s1610_s23 + $0x30] sm:$0xff] }
  0x6e   : > { %695 = vperm.xlu0 %1100, %v691_v3   ;;  %s409_s20 = scalar_lea.vmem %s1815_s0, %s988_s26  ;;  %v689_v15 = vld [vmem:[%s420_s17] sm:$0xff]  ;;  %v690_v24 = vld [vmem:[%s420_s17 + $0x8] sm:$0xff]  ;;  %1114 = vlog2.f32 %v1646_v14  ;;  %v600_v1 = vld [vmem:[%s1610_s23 + $0x38] sm:$0xff]  ;;  %s996_s7 = sshll.u32 %s1348_s25, 4 }
  0x6f   : > { %v1650_v18 = vld [vmem:[%s409_s20] sm:$0x77]  ;;  %713 = vperm.xlu1 %1101, %v689_v15   ;;  %v1652_v22 = vld [vmem:[%s409_s20 + $0x8] sm:$0x77]  ;;  %1116 = vlog2.f32 %v434_v27  ;;  %s400_s12 = scalar_lea.vmem [#allocation8], %s1598_s11  ;;  %s743_s24 = scalar_lea.sflag [#allocation9], %s1595_s10 }
  0x70   : > { %v604_v25 = vrot.slane %v1650_v18, %v603_v7  ;;  %v608_v26 = vrot.slane %v1650_v18, %v607_v8  ;;  %v612_v33 = vrot.slane %v1652_v22, %v603_v7  ;;  %v616_v34 = vrot.slane %v1652_v22, %v607_v8  ;;  %v598_v60 = vld [vmem:[%s1610_s23 + $0x28] sm:$0xff]  ;;  %s1702_s23 = sadd.s32 %s996_s7, %s1617_s27  ;;  %s776_s25 = sshll.u32 %s400_s12, 4  ;;  %s1713_s25 = int_to_ptr.vmem [resolvable:$true] %s776_s25 }
  0x71   : > { %1118 = vlog2.f32 %v451_v19  ;;  %v648_v39 = vrot.slane %v1650_v18, %v647_v16  ;;  %v652_v40 = vrot.slane %v1650_v18, %v651_v17  ;;  %v656_v46 = vrot.slane %v1652_v22, %v647_v16  ;;  %s997_s29 = sshll.u32 %s1702_s23, 7  ;;  %s1226_s19 = scalar_lea.vmem %s1713_s25, 1024 }
  0x72   : > { %700 = vperm.xlu0 %1100, %v692_v11   ;;  %v624_v35 = vrot.slane %v604_v25, %v603_v7  ;;  %v628_v38 = vrot.slane %v608_v26, %v603_v7  ;;  %1120 = vlog2.f32 %v452_v20  ;;  %v632_v41 = vrot.slane %v612_v33, %v603_v7  ;;  %v1103_v44 = vpop.eup %1102  ;;  %s1711_s27 = scalar_lea.hbm %s1821_s6, %s997_s29  ;;  %p1227_p1 = scmp.ne.s32.totalorder %s1713_s25, %s1226_s19 }
  0x73   : > { %718 = vperm.xlu1 %1101, %v690_v24   ;;  %v636_v42 = vrot.slane %v616_v34, %v603_v7  ;;  %1122 = vlog2.f32 %v453_v21  ;;  %v660_v47 = vrot.slane %v1652_v22, %v651_v17  ;;  %v1105_v48 = vpop.eup %1104  ;;  %v668_v54 = vrot.slane %v648_v39, %v647_v16  ;;  %p1850_p13 = scmp.ne.s32.totalorder %s1839_s13, 0  ;;  %s1368_s15 = smov [#allocation8]  }
  0x74   : > { %v637_v43 = vmul.f32 %v624_v35, %v593_v31  ;;  %v638_v45 = vmul.f32 %v628_v38, %v594_v32  ;;  %1124 = vlog2.f32 %v454_v23  ;;  %v639_v50 = vmul.f32 %v632_v41, %v595_v36  ;;  %v1107_v52 = vpop.eup %1106  ;;  %s1230_s26 = sshll.u32 %s1368_s15, 4  ;;  %s1231_s26 = int_to_ptr.vmem [resolvable:$false] %s1230_s26 }
  0x75   : > { %v640_v51 = vmul.f32 %v636_v42, %v596_v37  ;;  %1126 = vlog2.f32 %v455_v28  ;;  %v672_v55 = vrot.slane %v652_v40, %v647_v16  ;;  %v1109_v56 = vpop.eup %1108  ;;  %v676_v57 = vrot.slane %v656_v46, %v647_v16  ;;  %p1228_p7 = pnand %p1227_p1, %p1850_p13  ;;  %s1232_s18 = scalar_lea.vmem %s1231_s26, 2048 }
  0x76   : > { %1128 = vlog2.f32 %v456_v29  ;;  %v680_v58 = vrot.slane %v660_v47, %v647_v16  ;;  %v1111_v62 = vpop.eup %1110  ;;  %v1673_v63 = vadd.f32 %v668_v54, %v637_v43  ;;  %v488_v2 = vrot.slane %v1650_v18, %v1642_v12  ;;  %p1233_p9 = scmp.lt.s32.totalorder %s1713_s25, %s1231_s26  ;;  %p1234_p12 = scmp.lt.s32.totalorder %s1232_s18, %s1226_s19 }
  0x77   : > { %1130 = vlog2.f32 %v457_v30  ;;  %v1675_v0 = vadd.f32 %v672_v55, %v638_v45  ;;  %v1113_v3 = vpop.eup %1112  ;;  %v1680_v4 = vadd.f32 %v676_v57, %v639_v50  ;;  %v492_v7 = vrot.slane %v1650_v18, %v491_v53  ;;  %p1229_p10 = pneg %p1228_p7 }
  0x78   : > { %1132 = vlog2.f32 %v458_v49  ;;  %v1682_v5 = vadd.f32 %v680_v58, %v640_v51  ;;  %v1115_v6 = vpop.eup %1114  ;;  %v641_v8 = vmul.f32 %v624_v35, %v597_v59  ;;  %v642_v9 = vmul.f32 %v628_v38, %v598_v60  ;;  %p1235_p5 = por %p1234_p12, %p1233_p9 }
  0x79   : > { %v643_v10 = vmul.f32 %v632_v41, %v599_v61  ;;  %v1117_v11 = vpop.eup %1116  ;;  %v436_v13 = vmul.f32 0.6931472, %v1103_v44  ;;  %v496_v14 = vrot.slane %v1652_v22, %v1642_v12  ;;  %v500_v15 = vrot.slane %v1652_v22, %v491_v53 }
  0x7a   : > { %v644_v16 = vmul.f32 %v636_v42, %v600_v1  ;;  %v438_v19 = vmul.f32 0.6931472, %v1105_v48  ;;  %v1688_v20 = vadd.f32 %v668_v54, %v641_v8  ;;  %v1690_v21 = vadd.f32 %v672_v55, %v642_v9  ;;  %p1236_p11 = pnand %p1235_p5, %p1229_p10 }
  0x7b   : > { %v1119_v17 = vpop.eup %1118  ;;  %v1692_v23 = vadd.f32 %v676_v57, %v643_v10  ;;  %v440_v24 = vmul.f32 0.6931472, %v1107_v52  ;;  %v508_v26 = vrot.slane %v488_v2, %v1642_v12  ;;  %v442_v29 = vmul.f32 0.6931472, %v1109_v56 }
  0x7c   : > { %v1121_v18 = vpop.eup %1120  ;;  %v460_v25 = vmul.f32 0.6931472, %v1119_v17  ;;  %v1695_v27 = vadd.f32 %v680_v58, %v644_v16  ;;  %v512_v22 = vrot.slane %v492_v7, %v1642_v12  ;;  %v444_v32 = vmul.f32 0.6931472, %v1111_v62 }
  0x7d   : > { %v1123_v28 = vpop.eup %1122  ;;  %v462_v30 = vmul.f32 0.6931472, %v1121_v18  ;;  %v516_v35 = vrot.slane %v496_v14, %v1642_v12  ;;  %v446_v37 = vmul.f32 0.6931472, %v1113_v3  ;;  %v520_v40 = vrot.slane %v500_v15, %v1642_v12 }
  0x7e   : > { %v1125_v31 = vpop.eup %1124  ;;  %v464_v33 = vmul.f32 0.6931472, %v1123_v28  ;;  %v475_v34 = vsub.f32 %v436_v13, %v460_v25  ;;  %v448_v42 = vmul.f32 0.6931472, %v1115_v6  ;;  %v450_v47 = vmul.f32 0.6931472, %v1117_v11 }
  0x7f   : > { %v1127_v36 = vpop.eup %1126  ;;  %v466_v38 = vmul.f32 0.6931472, %v1125_v31  ;;  %v476_v39 = vsub.f32 %v438_v19, %v462_v30 }
  0x80   : > { %v1129_v41 = vpop.eup %1128  ;;  %v468_v43 = vmul.f32 0.6931472, %v1127_v36  ;;  %v477_v44 = vsub.f32 %v440_v24, %v464_v33  ;;  %v521_v45 = vadd.f32 %v508_v26, %v475_v34 }
  0x81   : > { %v1131_v46 = vpop.eup %1130  ;;  %v470_v48 = vmul.f32 0.6931472, %v1129_v41  ;;  %v478_v49 = vsub.f32 %v442_v29, %v466_v38  ;;  %v522_v50 = vadd.f32 %v512_v22, %v476_v39 }
  0x82   : > { %v1133_v51 = vpop.eup %1132  ;;  %v472_v52 = vmul.f32 0.6931472, %v1131_v46  ;;  %v479_v53 = vsub.f32 %v444_v32, %v468_v43  ;;  %v523_v54 = vadd.f32 %v516_v35, %v477_v44  ;;  %v529_v55 = vmul.f32 1.5, %v521_v45 }
  0x83   : > { %v474_v56 = vmul.f32 0.6931472, %v1133_v51  ;;  %v480_v57 = vsub.f32 %v446_v37, %v470_v48  ;;  %v524_v58 = vadd.f32 %v520_v40, %v478_v49  ;;  %v530_v59 = vmul.f32 1.5, %v522_v50 }
  0x84   : > { %v481_v12 = vsub.f32 %v448_v42, %v472_v52  ;;  %v525_v60 = vadd.f32 %v508_v26, %v479_v53  ;;  %v531_v61 = vmul.f32 1.5, %v523_v54  ;;  %v537_v62 = vsub.f32 0.0, %v529_v55 }
  0x85   : > { %v482_v1 = vsub.f32 %v450_v47, %v474_v56  ;;  %v526_v3 = vadd.f32 %v512_v22, %v480_v57  ;;  %v532_v2 = vmul.f32 1.5, %v524_v58  ;;  %v538_v6 = vsub.f32 0.0, %v530_v59 }
  0x86   : > { %v527_v7 = vadd.f32 %v516_v35, %v481_v12  ;;  %v533_v8 = vmul.f32 1.5, %v525_v60  ;;  %v539_v9 = vsub.f32 0.0, %v531_v61  ;;  %v545_v10 = vmul.f32 1.442695, %v537_v62 }
  0x87   : > { %v528_v11 = vadd.f32 %v520_v40, %v482_v1  ;;  %v534_v13 = vmul.f32 1.5, %v526_v3  ;;  %v540_v14 = vsub.f32 0.0, %v532_v2  ;;  %v547_v15 = vmul.f32 1.442695, %v538_v6 }
  0x88   : > { %v535_v16 = vmul.f32 1.5, %v527_v7  ;;  %v541_v17 = vsub.f32 0.0, %v533_v8  ;;  %1134 = vpow2.f32 %v545_v10  ;;  %v549_v19 = vmul.f32 1.442695, %v539_v9 }
  0x89   : > { %v536_v18 = vmul.f32 1.5, %v528_v11  ;;  %v542_v24 = vsub.f32 0.0, %v534_v13  ;;  %1136 = vpow2.f32 %v547_v15  ;;  %v551_v25 = vmul.f32 1.442695, %v540_v14 }
  0x8a   : > { %v543_v26 = vsub.f32 0.0, %v535_v16  ;;  %1138 = vpow2.f32 %v549_v19  ;;  %v553_v28 = vmul.f32 1.442695, %v541_v17 }
  0x8b   : > { %v544_v29 = vsub.f32 0.0, %v536_v18  ;;  %1140 = vpow2.f32 %v551_v25  ;;  %v555_v30 = vmul.f32 1.442695, %v542_v24 }
  0x8c   : > { %1142 = vpow2.f32 %v553_v28  ;;  %v557_v22 = vmul.f32 1.442695, %v543_v26 }
  0x8d   : > { %1144 = vpow2.f32 %v555_v30  ;;  %v559_v31 = vmul.f32 1.442695, %v544_v29 }
  0x8e   : > { %1146 = vpow2.f32 %v557_v22 }
  0x8f   : > { %1148 = vpow2.f32 %v559_v31 }
  0x92   : > { %v1135_v32 = vpop.eup %1134 }
  0x93   : > { %v1137_v33 = vpop.eup %1136  ;;  %v561_v34 = vadd.f32 1.0, %v1135_v32 }
  0x94   : > { %v1139_v35 = vpop.eup %1138  ;;  %v562_v36 = vadd.f32 1.0, %v1137_v33 }
  0x95   : > { %v1141_v37 = vpop.eup %1140  ;;  %v563_v38 = vadd.f32 1.0, %v1139_v35  ;;  %1150 = vrcp.f32 %v561_v34 }
  0x96   : > { %v1143_v39 = vpop.eup %1142  ;;  %v564_v40 = vadd.f32 1.0, %v1141_v37  ;;  %1152 = vrcp.f32 %v562_v36 }
  0x97   : > { %v1145_v41 = vpop.eup %1144  ;;  %v565_v42 = vadd.f32 1.0, %v1143_v39  ;;  %1154 = vrcp.f32 %v563_v38 }
  0x98   : > { %v1147_v43 = vpop.eup %1146  ;;  %v566_v44 = vadd.f32 1.0, %v1145_v41  ;;  %1156 = vrcp.f32 %v564_v40 }
  0x99   : > { %v1149_v45 = vpop.eup %1148  ;;  %v567_v46 = vadd.f32 1.0, %v1147_v43  ;;  %1158 = vrcp.f32 %v565_v42 }
  0x9a   : > { %v568_v47 = vadd.f32 1.0, %v1149_v45  ;;  %1160 = vrcp.f32 %v566_v44 }
  0x9b   : > { %1162 = vrcp.f32 %v567_v46 }
  0x9c   : > { %1164 = vrcp.f32 %v568_v47 }
  0x9f   : > { %v1151_v48 = vpop.eup %1150 }
  0xa0   : > { %v1153_v49 = vpop.eup %1152  ;;  %585 = vst [vmem:[%s400_s12] sm:$0xff] %v1151_v48 }
  0xa1   : > { %v1155_v50 = vpop.eup %1154  ;;  %586 = vst [vmem:[%s400_s12 + $0x8] sm:$0xff] %v1153_v49 }
  0xa2   : > { %v1157_v51 = vpop.eup %1156  ;;  %587 = vst [vmem:[%s400_s12 + $0x10] sm:$0xff] %v1155_v50 }
  0xa3   : > { %v1159_v52 = vpop.eup %1158  ;;  %588 = vst [vmem:[%s400_s12 + $0x18] sm:$0xff] %v1157_v51 }
  0xa4   : > { %v1161_v53 = vpop.eup %1160  ;;  %589 = vst [vmem:[%s400_s12 + $0x20] sm:$0xff] %v1159_v52 }
  0xa5   : > { %v1163_v54 = vpop.eup %1162  ;;  %590 = vst [vmem:[%s400_s12 + $0x28] sm:$0xff] %v1161_v53 }
  0xa6   : > { %v1165_v55 = vpop.eup %1164  ;;  %591 = vst [vmem:[%s400_s12 + $0x30] sm:$0xff] %v1163_v54 }
  0xa7   : > { %592 = vst [vmem:[%s400_s12 + $0x38] sm:$0xff] %v1165_v55 }
  0xa8   : > { %1239 = shalt.err (!%p1236_p11)
}
  0xa9   : > { %s1240_s14 = scalar_lea.hbm %s1711_s27, 1024  ;;  %s1244_s3 = scalar_lea.hbm %s1821_s6, 4096 }
  0xaa   : > { %p1241_p2 = scmp.ne.s32.totalorder %s1711_s27, %s1240_s14  ;;  %p1245_p8 = scmp.lt.u32.totalorder %s1711_s27, %s1821_s6 }
  0xab   : > { %p1246_p0 = scmp.lt.u32.totalorder %s1244_s3, %s1240_s14  ;;  %p1248_p1 = scmp.lt.u32.totalorder %s1240_s14, %s1711_s27 }
  0xac   : > { %p1242_p4 = pnand %p1241_p2, %p1850_p13 }
  0xad   : > { %p1247_p3 = por %p1246_p0, %p1245_p8 }
  0xae   : > { %p1243_p6 = pneg %p1242_p4 }
  0xaf   : > { %p1249_p7 = por %p1248_p1, %p1247_p3 }
  0xb1   : > { %p1250_p10 = pnand %p1249_p7, %p1243_p6 }
  0xb3   : > { %1253 = shalt.err (!%p1250_p10)
}
  0xb4   : > { %s1369_s12 = smov 512   ;;  %s1370_s30 = smov 1024  }
  0xb5   : > { %s1371_s9 = smov 32   ;;  %s393_s19 = scalar_lea.vmem [#allocation7], %s1598_s11 }
  0xb6   : > { %1010 = dma.vmem_to_hbm [thread:$0]  (%p1850_p13), %s1713_s25, 1024, %s1711_s27, %s743_s24, %s1369_s12, %s1370_s30, %s1371_s9  }
  0xb7   : > { %s758_s15 = sshll.u32 %s393_s19, 4  ;;  %s1756_s11 = scalar_lea.hbm %s1820_s5, %s997_s29  ;;  %s1758_s15 = int_to_ptr.vmem [resolvable:$true] %s758_s15 }
  0xb8   : > { %s738_s23 = scalar_lea.sflag [#allocation4], %s1595_s10  ;;  %s1254_s24 = scalar_lea.vmem %s1758_s15, 1024 }
  0xb9   : > { %p1255_p9 = scmp.ne.s32.totalorder %s1758_s15, %s1254_s24  ;;  %s1372_s29 = smov [#allocation7]  }
  0xba   : > { %s1258_s26 = sshll.u32 %s1372_s29, 4  ;;  %s1259_s26 = int_to_ptr.vmem [resolvable:$false] %s1258_s26 }
  0xbb   : > { %p1256_p12 = pnand %p1255_p9, %p1850_p13  ;;  %s1260_s18 = scalar_lea.vmem %s1259_s26, 2048 }
  0xbc   : > { %p1261_p11 = scmp.lt.s32.totalorder %s1758_s15, %s1259_s26  ;;  %p1262_p2 = scmp.lt.s32.totalorder %s1260_s18, %s1254_s24 }
  0xbd   : > { %p1257_p5 = pneg %p1256_p12 }
  0xbe   : > { %p1263_p4 = por %p1262_p2, %p1261_p11 }
  0xc0   : > { %p1264_p6 = pnand %p1263_p4, %p1257_p5 }
  0xed   : > { %v696_v56 = vpop.permute.xlu0 %695 }
  0xee   : > { %v703_v57 = vmul.f32 %v696_v56, %v1673_v63  ;;  %v704_v58 = vmul.f32 %v696_v56, %v1675_v0  ;;  %v705_v59 = vmul.f32 %v696_v56, %v1680_v4  ;;  %v706_v12 = vmul.f32 %v696_v56, %v1682_v5  ;;  %v714_v60 = vpop.permute.xlu1 %713 }
  0xf0   : > { %v721_v62 = vadd.f32 %v714_v60, %v703_v57  ;;  %v722_v1 = vadd.f32 %v714_v60, %v704_v58  ;;  %v723_v3 = vadd.f32 %v714_v60, %v705_v59  ;;  %v724_v2 = vadd.f32 %v714_v60, %v706_v12 }
  0xf1   : > { %v701_v61 = vpop.permute.xlu0 %700 }
  0xf2   : > { %v707_v6 = vmul.f32 %v701_v61, %v1688_v20  ;;  %v708_v7 = vmul.f32 %v701_v61, %v1690_v21  ;;  %v709_v63 = vmul.f32 %v701_v61, %v1692_v23  ;;  %v710_v0 = vmul.f32 %v701_v61, %v1695_v27  ;;  %729 = vst [vmem:[%s393_s19] sm:$0xff] %v721_v62  ;;  %v719_v4 = vpop.permute.xlu1 %718 }
  0xf3   : > { %730 = vst [vmem:[%s393_s19 + $0x8] sm:$0xff] %v722_v1  ;;  %731 = vst [vmem:[%s393_s19 + $0x10] sm:$0xff] %v723_v3 }
  0xf4   : > { %732 = vst [vmem:[%s393_s19 + $0x18] sm:$0xff] %v724_v2  ;;  %v725_v5 = vadd.f32 %v719_v4, %v707_v6  ;;  %v726_v20 = vadd.f32 %v719_v4, %v708_v7  ;;  %v727_v21 = vadd.f32 %v719_v4, %v709_v63  ;;  %v728_v23 = vadd.f32 %v719_v4, %v710_v0 }
  0xf6   : > { %733 = vst [vmem:[%s393_s19 + $0x20] sm:$0xff] %v725_v5  ;;  %734 = vst [vmem:[%s393_s19 + $0x28] sm:$0xff] %v726_v20 }
  0xf7   : > { %735 = vst [vmem:[%s393_s19 + $0x30] sm:$0xff] %v727_v21  ;;  %736 = vst [vmem:[%s393_s19 + $0x38] sm:$0xff] %v728_v23 }
  0xf8   : > { %1267 = shalt.err (!%p1264_p6)
}
  0xf9   : > { %s1268_s14 = scalar_lea.hbm %s1756_s11, 1024  ;;  %s1272_s3 = scalar_lea.hbm %s1820_s5, 4096 }
  0xfa   : > { %p1269_p8 = scmp.ne.s32.totalorder %s1756_s11, %s1268_s14  ;;  %p1273_p1 = scmp.lt.u32.totalorder %s1756_s11, %s1820_s5 }
  0xfb   : > { %p1274_p7 = scmp.lt.u32.totalorder %s1272_s3, %s1268_s14  ;;  %p1276_p9 = scmp.lt.u32.totalorder %s1268_s14, %s1756_s11 }
  0xfc   : > { %p1270_p0 = pnand %p1269_p8, %p1850_p13 }
  0xfd   : > { %p1275_p10 = por %p1274_p7, %p1273_p1 }
  0xfe   : > { %p1271_p3 = pneg %p1270_p0 }
  0xff   : > { %p1277_p12 = por %p1276_p9, %p1275_p10 }
 0x101   : > { %p1278_p5 = pnand %p1277_p12, %p1271_p3 }
 0x103   : > { %1281 = shalt.err (!%p1278_p5)
}
 0x104   : > { %1009 = dma.vmem_to_hbm [thread:$0]  (%p1850_p13), %s1758_s15, 1024, %s1756_s11, %s738_s23, %s1369_s12, %s1370_s30, %s1371_s9  }
 0x105 PF: > { %p1028_p11 = scmp.ge.s32.totalorder %s1360_s28, 2  ;;  %s791_s19 = sand.u32 1, %s1332_s21  }
 0x106   : > { %p1851_p2 = scmp.ne.s32.totalorder %s1840_s16, 0  ;;  %s792_s25 = scalar_lea.sflag [#allocation4], %s791_s19 }
 0x108   : > { %p1021_p4 = pnand %p1028_p11, %p1851_p2 }
 0x10a   : > { %1323 = dma.done.wait (!%p1021_p4), %s792_s25, 1024  }
 0x10b   : > { %1325 = vsyncadd (!%p1021_p4), %s792_s25, 4294966272  ;;  %s801_s13 = scalar_lea.sflag [#allocation9], %s791_s19 }
 0x10c   : > { %1327 = dma.done.wait (!%p1021_p4), %s801_s13, 1024  }
 0x10d   : > { %1329 = vsyncadd (!%p1021_p4), %s801_s13, 4294966272  ;;  %s29_s28 = sadd.s32 1, %s1360_s28   ;;  %s1852_s10 = sld [smem:[#allocation14_spill]] }
 0x10e   : > { %p26_p6 = scmp.ge.s32.totalorder %s29_s28, 6   ;;  %s1853_s23 = sld [smem:[#allocation19_spill]] }
 0x10f   : > { %s1854_s24 = sld [smem:[#allocation15_spill]]  ;;  %s1855_s25 = sld [smem:[#allocation16_spill]] }
 0x110   : > { %s1856_s26 = sld [smem:[#allocation17_spill]]  ;;  %s1857_s27 = sld [smem:[#allocation18_spill]] }
 0x111   : > { %s1858_s21 = smov %s1336_s22  ;;  %28 = sbr.rel (!%p26_p6) target bundleno = 13 (0xd), region = 124 }
 0x113   : > { %s1859_s22 = smov %s1852_s10 }
 0x118   :  { %806 = vsyncpa [#allocation3], 1 }
 0x119   :  { %808 = vsyncpa [#allocation3 + $0x1], 1 }
 0x11a   :  { %809 = vsyncpa [#allocation6], 1 }
 0x11b   :  { %811 = vsyncpa [#allocation6 + $0x1], 1 }
 0x11c   :  { %812 = vsyncpa [#allocation4], 1 }
 0x11d   :  { %814 = vsyncpa [#allocation4 + $0x1], 1 }
 0x11e   :  { %815 = vsyncpa [#allocation9], 1 }
 0x11f   :  { %817 = vsyncpa [#allocation9 + $0x1], 1 }

</bundles_post_ra>
